<compile_context>
chip_gen: v7x
topology: tpu7x:2x2x1
jax: 0.10.0
libtpu: 0.0.40
codegen_flags: <defaults>
</compile_context>

<pallas_src>
import jax
import jax.numpy as jnp
from jax.experimental import pallas as pl
from jax.experimental.pallas import tpu as pltpu


def bertfc_moe_kernel(ph_ref, bt_ref, wg_ref, bn_ref, wc_ref, bc_ref, o_ref):
    # grid = (batch tiles [parallel],); whole sequence length in one block.
    TB, L, H = ph_ref.shape

    ph3 = ph_ref[...]                                   # (TB, L, H)
    bt3 = bt_ref[...]

    # bf16 MXU operands (no-op when the backbone already emits bf16).
    ph2 = ph3.astype(jnp.bfloat16).reshape(TB * L, H)
    bt2 = bt3.astype(jnp.bfloat16).reshape(TB * L, H)

    # Gate Linear(2H -> 2) as ONE fused K=2H matmul; the lane concat of two
    # 128-lane-aligned bf16 tiles is essentially free and fills the 256-deep
    # MXU on v6e/v7x (on v5e the compiler splits it back into two K=128 passes).
    x_cat = jnp.concatenate([ph2, bt2], axis=-1)        # (TB*L, 2H) bf16
    gate = jnp.dot(x_cat, wg_ref[...],
                   preferred_element_type=jnp.float32)  # (TB*L, 2) f32

    # Eval-mode BatchNorm1d(maxlen) as a per-seq-position affine; the gate bias
    # is pre-folded into the shift on the host (shift' = bn_shift + bg*bn_scale).
    gate3 = gate.reshape(TB, L, 2)
    gate3 = gate3 * bn_ref[0][None, :, :] + bn_ref[1][None, :, :]

    # Sigmoid gating and mixture of the two experts (f32 elementwise path).
    g = jax.nn.sigmoid(gate3)                           # (TB, L, 2) f32
    fused = (g[..., 0:1] * ph3.astype(jnp.float32)
             + g[..., 1:2] * bt3.astype(jnp.float32))   # (TB, L, H) f32

    # Classifier Linear(L*H -> N): single K=L*H matmul against wc in its
    # natural row-major (L*H, N) layout (matches the PyTorch flatten order).
    flat = fused.astype(jnp.bfloat16).reshape(TB, L * H)
    logits = jnp.dot(flat, wc_ref[...], preferred_element_type=jnp.float32)
    o_ref[...] = (logits + bc_ref[...]).astype(o_ref.dtype)


def bertfc_forward(ph_out, bt_out, wg, bn_params, wc_flat, bc, *, tb=None):
    B, L, H = ph_out.shape
    N = bc.shape[-1]
    if tb is None:
        # >=2 parallel batch tiles so v7x's two TensorCores both get work;
        # on v5e/v6e (1 TC) the second step only costs one grid iteration.
        tb = B // 2 if (B % 2 == 0 and (B // 2) % 8 == 0) else B
    assert B % tb == 0 and tb % 8 == 0
    assert L % 16 == 0          # bf16 packs 16 sublanes per vreg

    # Tiny weights: host cast is negligible (the big sequence outputs are NOT
    # cast in the wrapper -- they arrive bf16 or are cast after the DMA).
    wg_bf = wg.astype(jnp.bfloat16)           # (2H, 2)
    wc_bf = wc_flat.astype(jnp.bfloat16)      # (L*H, N)

    return pl.pallas_call(
        bertfc_moe_kernel,
        out_shape=jax.ShapeDtypeStruct((B, N), jnp.float32),
        grid_spec=pltpu.PrefetchScalarGridSpec(
            num_scalar_prefetch=0,
            grid=(B // tb,),
            in_specs=[
                pl.BlockSpec((tb, L, H), lambda b: (b, 0, 0)),   # phobert seq out
                pl.BlockSpec((tb, L, H), lambda b: (b, 0, 0)),   # bert seq out
                pl.BlockSpec((2 * H, 2), lambda b: (0, 0)),      # gate weight
                pl.BlockSpec((2, L, 2), lambda b: (0, 0, 0)),    # [bn_scale, bn_shift'] pack
                pl.BlockSpec((L * H, N), lambda b: (0, 0)),      # classifier W (L*H, N)
                pl.BlockSpec((1, N), lambda b: (0, 0)),          # classifier bias
            ],
            out_specs=pl.BlockSpec((tb, N), lambda b: (b, 0)),
        ),
        compiler_params=pltpu.CompilerParams(
            dimension_semantics=("parallel",)),
    )(ph_out, bt_out, wg_bf, bn_params, wc_bf, bc)


def reference_forward(ph_bf, bt_bf, wg, bg, bn_scale, bn_shift, wc_flat, bc):
    # Mirrors the module math and the kernel's quantization choices
    # (bf16 matmul operands, f32 accumulation / elementwise path).
    B, L, H = ph_bf.shape
    wg_bf = wg.astype(jnp.bfloat16)
    wc_bf = wc_flat.astype(jnp.bfloat16)
    x_cat = jnp.concatenate([ph_bf, bt_bf], axis=-1)                # (B, L, 2H)
    gate = jnp.einsum("blk,kn->bln", x_cat, wg_bf,
                      preferred_element_type=jnp.float32) + bg      # (B, L, 2)
    gate = gate * bn_scale[None] + bn_shift[None]
    g = jax.nn.sigmoid(gate)
    fused = (g[..., 0:1] * ph_bf.astype(jnp.float32)
             + g[..., 1:2] * bt_bf.astype(jnp.float32))             # (B, L, H)
    flat = fused.astype(jnp.bfloat16).reshape(B, L * H)
    return jnp.dot(flat, wc_bf, preferred_element_type=jnp.float32) + bc


if __name__ == "__main__":
    # Small shapes consistent with the module: maxlen L, hidden H, num_labels N.
    B, L, H, N = 16, 16, 128, 3
    key = jax.random.PRNGKey(0)
    keys = jax.random.split(key, 10)

    # "Backbone" sequence outputs (stand-ins for phobert/bert last_hidden_state),
    # emitted in bf16 directly so the kernel wrapper does no extra HBM pass.
    ph_out = jax.random.normal(keys[0], (B, L, H), jnp.float32).astype(jnp.bfloat16)
    bt_out = jax.random.normal(keys[1], (B, L, H), jnp.float32).astype(jnp.bfloat16)

    # Gate: Linear(2*H, 2)
    wg = 0.02 * jax.random.normal(keys[2], (2 * H, 2), dtype=jnp.float32)
    bg = 0.02 * jax.random.normal(keys[3], (1, 2), dtype=jnp.float32)

    # BatchNorm1d(maxlen) eval-mode parameters -> per-position scale/shift.
    gamma = 1.0 + 0.1 * jax.random.normal(keys[4], (L,), dtype=jnp.float32)
    beta = 0.1 * jax.random.normal(keys[5], (L,), dtype=jnp.float32)
    run_mean = 0.1 * jax.random.normal(keys[6], (L,), dtype=jnp.float32)
    run_var = jnp.abs(jax.random.normal(keys[7], (L,), dtype=jnp.float32)) + 0.5
    eps = 1e-5
    scale_1d = gamma / jnp.sqrt(run_var + eps)
    shift_1d = beta - run_mean * scale_1d
    bn_scale = jnp.broadcast_to(scale_1d[:, None], (L, 2)).astype(jnp.float32)
    bn_shift = jnp.broadcast_to(shift_1d[:, None], (L, 2)).astype(jnp.float32)
    # Fold the gate bias into the BN shift: BN(xW + bg) = (xW)*s + (shift + bg*s).
    bn_shift_fused = bn_shift + bg * bn_scale
    bn_params = jnp.stack([bn_scale, bn_shift_fused], axis=0)       # (2, L, 2)

    # Classifier: Linear(H * L, N). Row-major flatten of (L, H) matches PyTorch,
    # so the (L*H, N) weight is used in its natural layout by the kernel.
    wc_flat = 0.02 * jax.random.normal(keys[8], (L * H, N), dtype=jnp.float32)
    bc = 0.02 * jax.random.normal(keys[9], (1, N), dtype=jnp.float32)

    logits = bertfc_forward(ph_out, bt_out, wg, bn_params, wc_flat, bc, tb=8)
    logits = jax.block_until_ready(logits)

    ref = reference_forward(ph_out, bt_out, wg, bg, bn_scale, bn_shift,
                            wc_flat, bc)
    assert logits.shape == (B, N)
    assert jnp.allclose(logits, ref, atol=2e-2, rtol=2e-2), (
        "mismatch:\n%s\nvs\n%s" % (logits, ref))
    print("KERNEL_OK")
</pallas_src>

<mosaic_0001>
module attributes {stable_mosaic.version = 11 : i64} {
  func.func @bertfc_moe_kernel(%arg0: i32, %arg1: memref<8x16x128xbf16, #tpu.memory_space<vmem>>, %arg2: memref<8x16x128xbf16, #tpu.memory_space<vmem>>, %arg3: memref<256x2xbf16, #tpu.memory_space<vmem>>, %arg4: memref<2x16x2xf32, #tpu.memory_space<vmem>>, %arg5: memref<2048x3xbf16, #tpu.memory_space<vmem>>, %arg6: memref<1x3xf32, #tpu.memory_space<vmem>>, %arg7: memref<8x3xf32, #tpu.memory_space<vmem>>) attributes {dimension_semantics = [#tpu.dimension_semantics<parallel>], iteration_bounds = array<i64: 2>, scalar_prefetch = 0 : i64, scratch_operands = 0 : i64, tpu.core_type = #tpu.core_type<tc>, window_params = [{transform_indices = @transform_0, window_bounds = array<i64: 8, 16, 128>}, {transform_indices = @transform_1, window_bounds = array<i64: 8, 16, 128>}, {pipeline_mode = #tpu.pipeline_mode<synchronous>, transform_indices = @transform_2, window_bounds = array<i64: 256, 2>}, {pipeline_mode = #tpu.pipeline_mode<synchronous>, transform_indices = @transform_3, window_bounds = array<i64: 2, 16, 2>}, {pipeline_mode = #tpu.pipeline_mode<synchronous>, transform_indices = @transform_4, window_bounds = array<i64: 2048, 3>}, {pipeline_mode = #tpu.pipeline_mode<synchronous>, transform_indices = @transform_5, window_bounds = array<i64: 1, 3>}, {transform_indices = @transform_6, window_bounds = array<i64: 8, 3>}]} {
    %c0 = arith.constant 0 : index
    %c0_0 = arith.constant 0 : index
    %c0_1 = arith.constant 0 : index
    %0 = vector.load %arg1[%c0, %c0_0, %c0_1] : memref<8x16x128xbf16, #tpu.memory_space<vmem>>, vector<8x16x128xbf16>
    %c0_2 = arith.constant 0 : index
    %c0_3 = arith.constant 0 : index
    %c0_4 = arith.constant 0 : index
    %1 = vector.load %arg2[%c0_2, %c0_3, %c0_4] : memref<8x16x128xbf16, #tpu.memory_space<vmem>>, vector<8x16x128xbf16>
    %2 = vector.shape_cast %0 : vector<8x16x128xbf16> to vector<128x128xbf16>
    %3 = vector.shape_cast %1 : vector<8x16x128xbf16> to vector<128x128xbf16>
    %4 = tpu.concatenate %2, %3 in 1 : vector<128x128xbf16>, vector<128x128xbf16> -> vector<128x256xbf16>
    %c0_5 = arith.constant 0 : index
    %c0_6 = arith.constant 0 : index
    %5 = vector.load %arg3[%c0_5, %c0_6] : memref<256x2xbf16, #tpu.memory_space<vmem>>, vector<256x2xbf16>
    %cst = arith.constant dense<0.000000e+00> : vector<128x2xf32>
    %6 = tpu.matmul %4, %5, %cst {dimension_numbers = #tpu.dot_dimension_numbers<[1], [0], [0], [1], [0, 0, 1, 1], [], []>} : vector<128x256xbf16>, vector<256x2xbf16>, vector<128x2xf32> -> vector<128x2xf32>
    %7 = vector.shape_cast %6 : vector<128x2xf32> to vector<8x16x2xf32>
    %c0_7 = arith.constant 0 : index
    %c0_8 = arith.constant 0 : index
    %c0_9 = arith.constant 0 : index
    %8 = vector.load %arg4[%c0_7, %c0_8, %c0_9] : memref<2x16x2xf32, #tpu.memory_space<vmem>>, vector<1x16x2xf32>
    %9 = vector.shape_cast %8 : vector<1x16x2xf32> to vector<16x2xf32>
    %10 = vector.shape_cast %9 : vector<16x2xf32> to vector<1x16x2xf32>
    %11 = vector.broadcast %10 : vector<1x16x2xf32> to vector<8x16x2xf32>
    %12 = arith.mulf %7, %11 : vector<8x16x2xf32>
    %c1 = arith.constant 1 : index
    %c0_10 = arith.constant 0 : index
    %c0_11 = arith.constant 0 : index
    %13 = vector.load %arg4[%c1, %c0_10, %c0_11] : memref<2x16x2xf32, #tpu.memory_space<vmem>>, vector<1x16x2xf32>
    %14 = vector.shape_cast %13 : vector<1x16x2xf32> to vector<16x2xf32>
    %15 = vector.shape_cast %14 : vector<16x2xf32> to vector<1x16x2xf32>
    %16 = vector.broadcast %15 : vector<1x16x2xf32> to vector<8x16x2xf32>
    %17 = arith.addf %12, %16 : vector<8x16x2xf32>
    %18 = arith.negf %17 : vector<8x16x2xf32>
    %19 = math.exp %18 : vector<8x16x2xf32>
    %cst_12 = arith.constant 1.000000e+00 : f32
    %20 = vector.broadcast %cst_12 : f32 to vector<8x16x2xf32>
    %21 = arith.addf %20, %19 : vector<8x16x2xf32>
    %22 = arith.divf %20, %21 : vector<8x16x2xf32>
    %23 = vector.extract_strided_slice %22 {offsets = [0, 0, 0], sizes = [8, 16, 1], strides = [1, 1, 1]} : vector<8x16x2xf32> to vector<8x16x1xf32>
    %24 = arith.extf %0 : vector<8x16x128xbf16> to vector<8x16x128xf32>
    %25 = vector.broadcast %23 : vector<8x16x1xf32> to vector<8x16x128xf32>
    %26 = arith.mulf %25, %24 : vector<8x16x128xf32>
    %27 = vector.extract_strided_slice %22 {offsets = [0, 0, 1], sizes = [8, 16, 1], strides = [1, 1, 1]} : vector<8x16x2xf32> to vector<8x16x1xf32>
    %28 = arith.extf %1 : vector<8x16x128xbf16> to vector<8x16x128xf32>
    %29 = vector.broadcast %27 : vector<8x16x1xf32> to vector<8x16x128xf32>
    %30 = arith.mulf %29, %28 : vector<8x16x128xf32>
    %31 = arith.addf %26, %30 : vector<8x16x128xf32>
    %32 = arith.truncf %31 : vector<8x16x128xf32> to vector<8x16x128xbf16>
    %33 = vector.shape_cast %32 : vector<8x16x128xbf16> to vector<8x2048xbf16>
    %c0_13 = arith.constant 0 : index
    %c0_14 = arith.constant 0 : index
    %34 = vector.load %arg5[%c0_13, %c0_14] : memref<2048x3xbf16, #tpu.memory_space<vmem>>, vector<2048x3xbf16>
    %cst_15 = arith.constant dense<0.000000e+00> : vector<8x3xf32>
    %35 = tpu.matmul %33, %34, %cst_15 {dimension_numbers = #tpu.dot_dimension_numbers<[1], [0], [0], [1], [0, 0, 1, 1], [], []>} : vector<8x2048xbf16>, vector<2048x3xbf16>, vector<8x3xf32> -> vector<8x3xf32>
    %c0_16 = arith.constant 0 : index
    %c0_17 = arith.constant 0 : index
    %36 = vector.load %arg6[%c0_16, %c0_17] : memref<1x3xf32, #tpu.memory_space<vmem>>, vector<1x3xf32>
    %37 = vector.broadcast %36 : vector<1x3xf32> to vector<8x3xf32>
    %38 = arith.addf %35, %37 : vector<8x3xf32>
    %c0_18 = arith.constant 0 : index
    %c0_19 = arith.constant 0 : index
    %39 = vector.load %arg7[%c0_18, %c0_19] : memref<8x3xf32, #tpu.memory_space<vmem>>, vector<8x3xf32>
    tpu.vector_store %arg7[%c0_18, %c0_19], %38 {strides = array<i32>} : memref<8x3xf32, #tpu.memory_space<vmem>>, vector<8x3xf32>,
    return
  }
  func.func @transform_0(%arg0: i32) -> (i32, i32, i32) {
    %c0_i32 = arith.constant 0 : i32
    %c0_i32_0 = arith.constant 0 : i32
    %c0_i32_1 = arith.constant 0 : i32
    return %arg0, %c0_i32, %c0_i32_0 : i32, i32, i32
  }
  func.func @transform_1(%arg0: i32) -> (i32, i32, i32) {
    %c0_i32 = arith.constant 0 : i32
    %c0_i32_0 = arith.constant 0 : i32
    %c0_i32_1 = arith.constant 0 : i32
    return %arg0, %c0_i32, %c0_i32_0 : i32, i32, i32
  }
  func.func @transform_2(%arg0: i32) -> (i32, i32) {
    %c0_i32 = arith.constant 0 : i32
    %c0_i32_0 = arith.constant 0 : i32
    %c0_i32_1 = arith.constant 0 : i32
    return %c0_i32, %c0_i32_0 : i32, i32
  }
  func.func @transform_3(%arg0: i32) -> (i32, i32, i32) {
    %c0_i32 = arith.constant 0 : i32
    %c0_i32_0 = arith.constant 0 : i32
    %c0_i32_1 = arith.constant 0 : i32
    %c0_i32_2 = arith.constant 0 : i32
    return %c0_i32, %c0_i32_0, %c0_i32_1 : i32, i32, i32
  }
  func.func @transform_4(%arg0: i32) -> (i32, i32) {
    %c0_i32 = arith.constant 0 : i32
    %c0_i32_0 = arith.constant 0 : i32
    %c0_i32_1 = arith.constant 0 : i32
    return %c0_i32, %c0_i32_0 : i32, i32
  }
  func.func @transform_5(%arg0: i32) -> (i32, i32) {
    %c0_i32 = arith.constant 0 : i32
    %c0_i32_0 = arith.constant 0 : i32
    %c0_i32_1 = arith.constant 0 : i32
    return %c0_i32, %c0_i32_0 : i32, i32
  }
  func.func @transform_6(%arg0: i32) -> (i32, i32) {
    %c0_i32 = arith.constant 0 : i32
    %c0_i32_0 = arith.constant 0 : i32
    return %arg0, %c0_i32 : i32, i32
  }
}

</mosaic_0001>

<bundles_post_ra>
// kernel: tpu_custom_call.1
= control target key start
LH: loop header
LB: loop body
LE: loop exit
PB: predicated region body
PF: predicated region fallthrough
CT: control target
= control target key end

     0   :  { %s3361_s21 = smov 0   ;;  %s4108_s0 = inlined_call_operand.vmem [shape: bf16[16,16,128], index: 0, kind: input, shape index: {}]   ;;  %s4109_s1 = inlined_call_operand.vmem [shape: bf16[16,16,128], index: 1, kind: input, shape index: {}]   ;;  %s4110_s2 = inlined_call_operand.vmem [shape: bf16[256,2], index: 2, kind: input, shape index: {}]   ;;  %s4111_s3 = inlined_call_operand.vmem [shape: f32[2,16,2], index: 3, kind: input, shape index: {}]   ;;  %s4112_s4 = inlined_call_operand.vmem [shape: bf16[2048,3], index: 4, kind: input, shape index: {}]   ;;  %s4113_s5 = inlined_call_operand.vmem [shape: f32[1,3], index: 5, kind: input, shape index: {}]   ;;  %s4114_s6 = inlined_call_operand.vmem [shape: f32[16,3], index: 6, kind: output, shape index: {}]  }
   0x1 LB: > { %s3367_s22 = sadd.s32 4294967295, %s3320_s21   ;;  %p2589_p0 = scmp.ge.s32.totalorder %s3320_s21, 1  ;;  %s3320_s21 = sphi %s3361_s21, %s16_s21  }
   0x2   : > { %p226_p1 = scmp.lt.s32.totalorder %s3320_s21, 3 }
   0x4   : > { %p227_p2 = pnand %p2589_p0, %p226_p1 }
   0x6   : > { %230 = sbr.rel (%p227_p2) target bundleno = 861 (0x35d), region = 44 }
   0xd   : > { %v3063_v0 = vld [vmem:[%s4110_s2 + $0x40] sm:$0xff]   ;;  %s2590_s25 = sshll.u32 %s3367_s22, 3  ;;  %v3065_v2 = vld [vmem:[%s4110_s2 + $0x48] sm:$0xff]   ;;  %v3067_v4 = vld [vmem:[%s4110_s2 + $0x50] sm:$0xff]   ;;  %v4115_v32 = vmov 0   ;;  %v3323_v33 = vmov 1  }
   0xe   : > { %v3064_v1 = vld [vmem:[%s4110_s2] sm:$0xff]   ;;  %2780 = vmatprep.subr.bf16.mxu0 %v3063_v0  ;;  %p263_p3 = scmp.lt.s32.totalorder %s2590_s25, 15  ;;  %v3066_v3 = vld [vmem:[%s4110_s2 + $0x8] sm:$0xff]   ;;  %v3068_v5 = vld [vmem:[%s4110_s2 + $0x10] sm:$0xff]   ;;  %3032 = vset.pattern.permute.xlu0 %v4115_v32  ;;  %p276_p4 = scmp.lt.s32.totalorder %s3367_s22, 1  ;;  %vm2518_vm0 = vcmask 23552  }
   0xf   : > { %2781 = vmatpush3.bf16.msra.mxu0 %v3064_v1  ;;  %v3069_v6 = vld [vmem:[%s4110_s2 + $0x58] sm:$0xff]   ;;  %v3071_v8 = vld [vmem:[%s4110_s2 + $0x60] sm:$0xff]   ;;  %v3073_v10 = vld [vmem:[%s4110_s2 + $0x68] sm:$0xff]   ;;  %3035 = vset.pattern.permute.xlu1 %v3323_v33 }
  0x10   : > { %2782 = vmatprep.subr.bf16.mxu0 %v3065_v2  ;;  %s4135_s25 = smov (!%p263_p3, %s2590_s25), 15  ;;  %v3070_v7 = vld [vmem:[%s4110_s2 + $0x18] sm:$0xff]   ;;  %v3072_v9 = vld [vmem:[%s4110_s2 + $0x20] sm:$0xff]   ;;  %v3074_v12 = vld [vmem:[%s4110_s2 + $0x28] sm:$0xff]   ;;  %s4137_s22 = smov (!%p276_p4, %s3367_s22), 1 }
  0x11   : > { %s2778_s14 = sshll.u32 %s4135_s25, 3  ;;  %v3075_v13 = vld [vmem:[%s4110_s2 + $0x70] sm:$0xff]   ;;  %v3077_v15 = vld [vmem:[%s4110_s2 + $0x78] sm:$0xff]   ;;  %v3466_v36 = vld [vmem:[%s4111_s3] sm:$0xff]  ;;  %s2596_s28 = sshll.u32 %s4137_s22, 3 }
  0x12   : > { %s3402_s23 = scalar_lea.vmem %s4109_s1, %s2778_s14  ;;  %v3076_v14 = vld [vmem:[%s4110_s2 + $0x30] sm:$0xff]   ;;  %s3426_s15 = scalar_lea.vmem %s4108_s0, %s2778_s14  ;;  %v3078_v16 = vld [vmem:[%s4110_s2 + $0x38] sm:$0xff]   ;;  %v3476_v41 = vld [vmem:[%s4111_s3 + $0x8] sm:$0xff] }
  0x13   : > { %2783 = vmatpush3.bf16.msra.mxu0 %v3066_v3  ;;  %v297_v11 = vld [vmem:[%s3402_s23] sm:$0xff]   ;;  %v299_v18 = vld [vmem:[%s3402_s23 + $0x8] sm:$0xff]   ;;  %v301_v20 = vld [vmem:[%s3402_s23 + $0x10] sm:$0xff]   ;;  %s279_s7 = scalar_lea.vmem %s4114_s6, %s2596_s28 }
  0x14   : > { %2784 = vmatprep.subr.bf16.mxu0 %v3067_v4  ;;  %569 = vmatprep.mubr.bf16.mxu0 %v297_v11  ;;  %v281_v17 = vld [vmem:[%s3426_s15] sm:$0xff]   ;;  %v283_v19 = vld [vmem:[%s3426_s15 + $0x8] sm:$0xff]   ;;  %v285_v21 = vld [vmem:[%s3426_s15 + $0x10] sm:$0xff]  }
  0x15   : > { %v303_v22 = vld [vmem:[%s3402_s23 + $0x18] sm:$0xff]   ;;  %v305_v24 = vld [vmem:[%s3402_s23 + $0x20] sm:$0xff]   ;;  %v307_v26 = vld [vmem:[%s3402_s23 + $0x28] sm:$0xff]  }
  0x16   : > { %v287_v23 = vld [vmem:[%s3426_s15 + $0x18] sm:$0xff]   ;;  %v289_v25 = vld [vmem:[%s3426_s15 + $0x20] sm:$0xff]   ;;  %v3442_v27 = vld [vmem:[%s3426_s15 + $0x28] sm:$0xff]  }
  0x17   : > { %2785 = vmatpush3.bf16.msra.mxu0 %v3068_v5  ;;  %v3445_v28 = vld [vmem:[%s3402_s23 + $0x30] sm:$0xff]   ;;  %v3452_v30 = vld [vmem:[%s3402_s23 + $0x38] sm:$0xff]  }
  0x18   : > { %2786 = vmatprep.subr.bf16.mxu0 %v3069_v6  ;;  %v3448_v29 = vld [vmem:[%s3426_s15 + $0x30] sm:$0xff]   ;;  %v3456_v31 = vld [vmem:[%s3426_s15 + $0x38] sm:$0xff]  }
  0x19   : > { %v3471_v39 = vld [vmem:[%s4111_s3 + $0x10] sm:$0xff]  ;;  %v3482_v44 = vld [vmem:[%s4111_s3 + $0x18] sm:$0xff] }
  0x1b   : > { %2787 = vmatpush3.bf16.msra.mxu0 %v3070_v7 }
  0x1c   : > { %2788 = vmatprep.subr.bf16.mxu0 %v3071_v8 }
  0x1f   : > { %2789 = vmatpush3.bf16.msra.mxu0 %v3072_v9 }
  0x20   : > { %2790 = vmatprep.subr.bf16.mxu0 %v3073_v10 }
  0x23   : > { %2791 = vmatpush3.bf16.msra.mxu0 %v3074_v12 }
  0x24   : > { %2792 = vmatprep.subr.bf16.mxu0 %v3075_v13 }
  0x27   : > { %2793 = vmatpush3.bf16.msra.mxu0 %v3076_v14 }
  0x28   : > { %2794 = vmatprep.subr.bf16.mxu0 %v3077_v15 }
  0x2b   : > { %2795 = vmatpush3.bf16.msra.mxu0 %v3078_v16 }
  0x2e   : > { %570 = vmatmul.mubr.bf16.vlgmr.msra.gmra.mrb[0].mxu0 %v281_v17 }
  0x2f   : > { %577 = vmatprep.mubr.bf16.mxu0 %v299_v18 }
  0x36   : > { %578 = vmatmul.mubr.bf16.gmra.mrb[4].mxu0 %v283_v19 }
  0x37   : > { %585 = vmatprep.mubr.bf16.mxu0 %v301_v20 }
  0x3e   : > { %586 = vmatmul.mubr.bf16.gmra.mrb[8].mxu0 %v285_v21 }
  0x3f   : > { %593 = vmatprep.mubr.bf16.mxu0 %v303_v22 }
  0x46   : > { %594 = vmatmul.mubr.bf16.gmra.mrb[12].mxu0 %v287_v23 }
  0x47   : > { %601 = vmatprep.mubr.bf16.mxu0 %v305_v24 }
  0x4e   : > { %602 = vmatmul.mubr.bf16.gmra.mrb[16].mxu0 %v289_v25 }
  0x4f   : > { %609 = vmatprep.mubr.bf16.mxu0 %v307_v26 }
  0x56   : > { %610 = vmatmul.mubr.bf16.gmra.mrb[20].mxu0 %v3442_v27 }
  0x57   : > { %617 = vmatprep.mubr.bf16.mxu0 %v3445_v28 }
  0x5e   : > { %618 = vmatmul.mubr.bf16.gmra.mrb[24].mxu0 %v3448_v29 }
  0x5f   : > { %625 = vmatprep.mubr.bf16.mxu0 %v3452_v30 }
  0x66   : > { %626 = vmatmul.mubr.bf16.gmra.mrb[28].mxu0 %v3456_v31 }
 0x101   : > { %v2796_v34 = vpop.f32.mrb[0].mxu0 }
 0x102   : > { %v2797_v35 = vpop.f32.mrb[1].mxu0 }
 0x103   : > { %v2798_v37 = vadd.f32 %v2797_v35, %v2796_v34  ;;  %v2799_v38 = vpop.f32.mrb[2].mxu0 }
 0x104   : > { %v2800_v40 = vpop.f32.mrb[3].mxu0 }
 0x105   : > { %v636_v42 = vmul.f32 %v2798_v37, %v3466_v36  ;;  %v2801_v43 = vadd.f32 %v2800_v40, %v2799_v38 }
 0x107   : > { %v655_v45 = vadd.f32 %v3471_v39, %v636_v42  ;;  %v637_v46 = vmul.f32 %v2801_v43, %v3476_v41 }
 0x109   : > { %v2631_v47 = vmul.f32 -1.442695, %v655_v45  ;;  %v656_v48 = vadd.f32 %v3482_v44, %v637_v46  ;;  %v2802_v49 = vpop.f32.mrb[4].mxu0 }
 0x10a   : > { %v2803_v50 = vpop.f32.mrb[5].mxu0 }
 0x10b   : > { %3239 = vpow2.f32 %v2631_v47  ;;  %v2632_v51 = vmul.f32 -1.442695, %v656_v48  ;;  %v2804_v52 = vadd.f32 %v2803_v50, %v2802_v49  ;;  %v2805_v53 = vpop.f32.mrb[6].mxu0 }
 0x10c   : > { %v2806_v54 = vpop.f32.mrb[7].mxu0 }
 0x10d   : > { %3241 = vpow2.f32 %v2632_v51  ;;  %v638_v55 = vmul.f32 %v2804_v52, %v3466_v36  ;;  %v2807_v56 = vadd.f32 %v2806_v54, %v2805_v53 }
 0x10f   : > { %v657_v57 = vadd.f32 %v3471_v39, %v638_v55  ;;  %v639_v58 = vmul.f32 %v2807_v56, %v3476_v41 }
 0x111   : > { %v2633_v59 = vmul.f32 -1.442695, %v657_v57  ;;  %v658_v60 = vadd.f32 %v3482_v44, %v639_v58  ;;  %v2808_v61 = vpop.f32.mrb[8].mxu0 }
 0x112   : > { %v2809_v62 = vpop.f32.mrb[9].mxu0 }
 0x113   : > { %3243 = vpow2.f32 %v2633_v59  ;;  %v2634_v63 = vmul.f32 -1.442695, %v658_v60  ;;  %v2810_v0 = vadd.f32 %v2809_v62, %v2808_v61  ;;  %v2811_v1 = vpop.f32.mrb[10].mxu0 }
 0x114   : > { %v2812_v2 = vpop.f32.mrb[11].mxu0 }
 0x115   : > { %v3240_v3 = vpop.eup %3239  ;;  %v640_v4 = vmul.f32 %v2810_v0, %v3466_v36  ;;  %v2813_v5 = vadd.f32 %v2812_v2, %v2811_v1  ;;  %3245 = vpow2.f32 %v2634_v63 }
 0x116   : > { %v719_v6 = vadd.f32 1.0, %v3240_v3 }
 0x117   : > { %v3242_v7 = vpop.eup %3241  ;;  %v659_v8 = vadd.f32 %v3471_v39, %v640_v4  ;;  %v641_v9 = vmul.f32 %v2813_v5, %v3476_v41 }
 0x118   : > { %3247 = vrcp.f32 %v719_v6  ;;  %v720_v10 = vadd.f32 1.0, %v3242_v7 }
 0x119   : > { %v2635_v11 = vmul.f32 -1.442695, %v659_v8  ;;  %v660_v12 = vadd.f32 %v3482_v44, %v641_v9  ;;  %v2814_v13 = vpop.f32.mrb[12].mxu0 }
 0x11a   : > { %3249 = vrcp.f32 %v720_v10  ;;  %v2815_v14 = vpop.f32.mrb[13].mxu0 }
 0x11b   : > { %3251 = vpow2.f32 %v2635_v11  ;;  %v2636_v15 = vmul.f32 -1.442695, %v660_v12  ;;  %v2816_v16 = vadd.f32 %v2815_v14, %v2814_v13  ;;  %v2817_v17 = vpop.f32.mrb[14].mxu0 }
 0x11c   : > { %v2818_v18 = vpop.f32.mrb[15].mxu0 }
 0x11d   : > { %v3244_v19 = vpop.eup %3243  ;;  %v642_v20 = vmul.f32 %v2816_v16, %v3466_v36  ;;  %v2819_v21 = vadd.f32 %v2818_v18, %v2817_v17  ;;  %3253 = vpow2.f32 %v2636_v15 }
 0x11e   : > { %v721_v22 = vadd.f32 1.0, %v3244_v19 }
 0x11f   : > { %v661_v23 = vadd.f32 %v3471_v39, %v642_v20  ;;  %v643_v24 = vmul.f32 %v2819_v21, %v3476_v41  ;;  %v3246_v25 = vpop.eup %3245 }
 0x120   : > { %3255 = vrcp.f32 %v721_v22  ;;  %v722_v40 = vadd.f32 1.0, %v3246_v25 }
 0x121   : > { %v2637_v26 = vmul.f32 -1.442695, %v661_v23  ;;  %v662_v34 = vadd.f32 %v3482_v44, %v643_v24  ;;  %v2820_v35 = vpop.f32.mrb[16].mxu0 }
 0x122   : > { %v3248_v37 = vpop.eup %3247  ;;  %v2821_v38 = vpop.f32.mrb[17].mxu0 }
 0x123   : > { %3257 = vpow2.f32 %v2637_v26  ;;  %785 = vperm.xlu0 %3032, %v3248_v37   ;;  %v2822_v42 = vadd.f32 %v2821_v38, %v2820_v35  ;;  %v2823_v43 = vpop.f32.mrb[18].mxu0  ;;  %v2638_v48 = vmul.f32 -1.442695, %v662_v34 }
 0x124   : > { %v3250_v45 = vpop.eup %3249  ;;  %v2824_v46 = vpop.f32.mrb[19].mxu0  ;;  %3259 = vrcp.f32 %v722_v40 }
 0x125   : > { %v3252_v47 = vpop.eup %3251  ;;  %900 = vperm.xlu1 %3035, %v3250_v45   ;;  %v644_v49 = vmul.f32 %v2822_v42, %v3466_v36  ;;  %v2825_v50 = vadd.f32 %v2824_v46, %v2823_v43  ;;  %3261 = vpow2.f32 %v2638_v48 }
 0x126   : > { %v723_v51 = vadd.f32 1.0, %v3252_v47 }
 0x127   : > { %3033 = vset.pattern.permute.xlu0 %v3323_v33  ;;  %v663_v52 = vadd.f32 %v3471_v39, %v644_v49  ;;  %v645_v53 = vmul.f32 %v2825_v50, %v3476_v41  ;;  %v3254_v54 = vpop.eup %3253 }
 0x128   : > { %896 = vperm.xlu0 %3033, %v3248_v37   ;;  %3263 = vrcp.f32 %v723_v51  ;;  %v724_v0 = vadd.f32 1.0, %v3254_v54 }
 0x129   : > { %v2639_v55 = vmul.f32 -1.442695, %v663_v52  ;;  %3036 = vset.pattern.permute.xlu1 %v4115_v32  ;;  %v2826_v56 = vpop.f32.mrb[20].mxu0  ;;  %v664_v59 = vadd.f32 %v3482_v44, %v645_v53 }
 0x12a   : > { %v3256_v57 = vpop.eup %3255  ;;  %v2827_v58 = vpop.f32.mrb[21].mxu0 }
 0x12b   : > { %795 = vperm.xlu1 %3036, %v3256_v57   ;;  %v2828_v60 = vadd.f32 %v2827_v58, %v2826_v56  ;;  %v2829_v61 = vpop.f32.mrb[22].mxu0  ;;  %3265 = vpow2.f32 %v2639_v55  ;;  %v2640_v3 = vmul.f32 -1.442695, %v664_v59 }
 0x12c   : > { %3034 = vset.pattern.permute.xlu0 %v4115_v32  ;;  %v2830_v62 = vpop.f32.mrb[23].mxu0  ;;  %3267 = vrcp.f32 %v724_v0 }
 0x12d   : > { %v3258_v63 = vpop.eup %3257  ;;  %790 = vperm.xlu0 %3034, %v3250_v45   ;;  %v646_v1 = vmul.f32 %v2828_v60, %v3466_v36  ;;  %v2831_v2 = vadd.f32 %v2830_v62, %v2829_v61  ;;  %3269 = vpow2.f32 %v2640_v3 }
 0x12e   : > { %v725_v5 = vadd.f32 1.0, %v3258_v63  ;;  %v3260_v6 = vpop.eup %3259 }
 0x12f   : > { %3037 = vset.pattern.permute.xlu1 %v3323_v33  ;;  %v665_v4 = vadd.f32 %v3471_v39, %v646_v1  ;;  %v647_v7 = vmul.f32 %v2831_v2, %v3476_v41  ;;  %v3262_v10 = vpop.eup %3261 }
 0x130   : > { %904 = vperm.xlu1 %3037, %v3256_v57   ;;  %3271 = vrcp.f32 %v725_v5  ;;  %v726_v20 = vadd.f32 1.0, %v3262_v10  ;;  %v3095_v5 = vld [vmem:[%s4112_s4 + $0x40] sm:$0xff]   ;;  %v3099_v10 = vld [vmem:[%s4112_s4 + $0x48] sm:$0xff]  }
 0x131   : > { %3039 = vset.pattern.permute.xlu0 %v3323_v33  ;;  %v2832_v8 = vpop.f32.mrb[24].mxu0  ;;  %v2641_v11 = vmul.f32 -1.442695, %v665_v4  ;;  %v666_v16 = vadd.f32 %v3482_v44, %v647_v7  ;;  %v3097_v7 = vld [vmem:[%s4112_s4] sm:$0xff]   ;;  %2844 = vmatprep.subr.bf16.mxu1 %v3095_v5 }
 0x132   : > { %908 = vperm.xlu0 %3039, %v3260_v6   ;;  %v2833_v9 = vpop.f32.mrb[25].mxu0  ;;  %v3264_v14 = vpop.eup %3263  ;;  %2845 = vmatpush3.bf16.msra.mxu1 %v3097_v7  ;;  %v3303_v7 = vld [vmem:[%s3402_s23] sm:$0xff]  }
 0x133   : > { %v2834_v12 = vadd.f32 %v2833_v9, %v2832_v8  ;;  %v2835_v13 = vpop.f32.mrb[26].mxu0  ;;  %3273 = vpow2.f32 %v2641_v11  ;;  %v2642_v21 = vmul.f32 -1.442695, %v666_v16  ;;  %v3098_v8 = vld [vmem:[%s4112_s4 + $0x100] sm:$0xff]   ;;  %v3100_v11 = vld [vmem:[%s4112_s4 + $0x148] sm:$0xff]   ;;  %2846 = vmatprep.subr.bf16.mxu1 %v3099_v10  ;;  %v3104_v16 = vld [vmem:[%s4112_s4 + $0x150] sm:$0xff]  }
 0x134   : > { %3038 = vset.pattern.permute.xlu1 %v4115_v32  ;;  %v2836_v15 = vpop.f32.mrb[27].mxu0  ;;  %3275 = vrcp.f32 %v726_v20  ;;  %v3107_v20 = vld [vmem:[%s4112_s4 + $0x58] sm:$0xff]   ;;  %v3304_v10 = vld [vmem:[%s3426_s15] sm:$0xff]  }
 0x135   : > { %800 = vperm.xlu1 %3038, %v3260_v6   ;;  %v648_v17 = vmul.f32 %v2834_v12, %v3466_v36  ;;  %v2837_v18 = vadd.f32 %v2836_v15, %v2835_v13  ;;  %v3266_v19 = vpop.eup %3265  ;;  %3277 = vpow2.f32 %v2642_v21  ;;  %v3096_v6 = vld [vmem:[%s4112_s4 + $0x140] sm:$0xff]   ;;  %v3101_v12 = vld [vmem:[%s4112_s4 + $0x8] sm:$0xff]   ;;  %v3103_v15 = vld [vmem:[%s4112_s4 + $0x50] sm:$0xff]  }
 0x136   : > { %3040 = vset.pattern.permute.xlu0 %v4115_v32  ;;  %v727_v24 = vadd.f32 1.0, %v3266_v19  ;;  %v3268_v26 = vpop.eup %3267  ;;  %2888 = vmatprep.subr.bf16.mxu0 %v3096_v6  ;;  %v3102_v13 = vld [vmem:[%s4112_s4 + $0x108] sm:$0xff]   ;;  %v3108_v21 = vld [vmem:[%s4112_s4 + $0x158] sm:$0xff]  }
 0x137   : > { %805 = vperm.xlu0 %3040, %v3264_v14   ;;  %v667_v22 = vadd.f32 %v3471_v39, %v648_v17  ;;  %v649_v34 = vmul.f32 %v2837_v18, %v3476_v41  ;;  %v3270_v40 = vpop.eup %3269  ;;  %2889 = vmatpush3.bf16.msra.mxu0 %v3098_v8  ;;  %v3105_v17 = vld [vmem:[%s4112_s4 + $0x10] sm:$0xff]   ;;  %v879_v8 = vunpack.c.l.bf16 %v3303_v7 }
 0x138   : > { %3279 = vrcp.f32 %v727_v24  ;;  %v728_v51 = vadd.f32 1.0, %v3270_v40  ;;  %2890 = vmatprep.subr.bf16.mxu0 %v3100_v11  ;;  %2847 = vmatpush3.bf16.msra.mxu1 %v3101_v12  ;;  %v3106_v18 = vld [vmem:[%s4112_s4 + $0x110] sm:$0xff]   ;;  %v3111_v24 = vld [vmem:[%s4112_s4 + $0x60] sm:$0xff]   ;;  %v767_v11 = vunpack.c.l.bf16 %v3304_v10  ;;  %v3305_v12 = vld [vmem:[%s3426_s15 + $0x8] sm:$0xff]  }
 0x139   : > { %3041 = vset.pattern.permute.xlu1 %v3323_v33  ;;  %v2838_v23 = vpop.f32.mrb[28].mxu0  ;;  %v2643_v42 = vmul.f32 -1.442695, %v667_v22  ;;  %v668_v47 = vadd.f32 %v3482_v44, %v649_v34  ;;  %2848 = vmatprep.subr.bf16.mxu1 %v3103_v15  ;;  %v3109_v22 = vld [vmem:[%s4112_s4 + $0x18] sm:$0xff]   ;;  %v3115_v34 = vld [vmem:[%s4112_s4 + $0x68] sm:$0xff]   ;;  %v3119_v40 = vld [vmem:[%s4112_s4 + $0x70] sm:$0xff]  }
 0x13a   : > { %912 = vperm.xlu1 %3041, %v3264_v14   ;;  %v2839_v25 = vpop.f32.mrb[29].mxu0  ;;  %v3272_v46 = vpop.eup %3271  ;;  %v3306_v15 = vld [vmem:[%s3402_s23 + $0x8] sm:$0xff]  }
 0x13b   : > { %3043 = vset.pattern.permute.xlu0 %v3323_v33  ;;  %v2840_v35 = vadd.f32 %v2839_v25, %v2838_v23  ;;  %v2841_v37 = vpop.f32.mrb[30].mxu0  ;;  %3281 = vpow2.f32 %v2643_v42  ;;  %v2644_v52 = vmul.f32 -1.442695, %v668_v47  ;;  %2891 = vmatpush3.bf16.msra.mxu0 %v3102_v13  ;;  %v3110_v23 = vld [vmem:[%s4112_s4 + $0x118] sm:$0xff]   ;;  %v3112_v25 = vld [vmem:[%s4112_s4 + $0x160] sm:$0xff]   ;;  %v3120_v42 = vld [vmem:[%s4112_s4 + $0x170] sm:$0xff]   ;;  %v769_v13 = vunpack.c.l.bf16 %v3305_v12 }
 0x13c   : > { %916 = vperm.xlu0 %3043, %v3268_v26   ;;  %v2842_v38 = vpop.f32.mrb[31].mxu0  ;;  %3283 = vrcp.f32 %v728_v51  ;;  %2892 = vmatprep.subr.bf16.mxu0 %v3104_v16  ;;  %v3124_v47 = vld [vmem:[%s4112_s4 + $0x178] sm:$0xff]   ;;  %v3128_v51 = vld [vmem:[%s4112_s4 + $0x240] sm:$0xff]   ;;  %v881_v16 = vunpack.c.l.bf16 %v3306_v15 }
 0x13d   : > { %v650_v43 = vmul.f32 %v2840_v35, %v3466_v36  ;;  %v2843_v45 = vadd.f32 %v2842_v38, %v2841_v37  ;;  %v3274_v50 = vpop.eup %3273  ;;  %3285 = vpow2.f32 %v2644_v52  ;;  %2849 = vmatpush3.bf16.msra.mxu1 %v3105_v17  ;;  %v3116_v35 = vld [vmem:[%s4112_s4 + $0x168] sm:$0xff]   ;;  %v882_v17 = vunpack.c.h.bf16 %v3306_v15 }
 0x13e   : > { %3042 = vset.pattern.permute.xlu1 %v4115_v32  ;;  %v729_v53 = vadd.f32 1.0, %v3274_v50  ;;  %v3276_v54 = vpop.eup %3275  ;;  %2850 = vmatprep.subr.bf16.mxu1 %v3107_v20  ;;  %v3117_v37 = vld [vmem:[%s4112_s4 + $0x28] sm:$0xff]   ;;  %v3127_v50 = vld [vmem:[%s4112_s4 + $0xc0] sm:$0xff]   ;;  %v3693_v20 = vld [vmem:[%s3426_s15 + $0x10] sm:$0xff]  }
 0x13f   : > { %810 = vperm.xlu1 %3042, %v3268_v26   ;;  %v669_v48 = vadd.f32 %v3471_v39, %v650_v43  ;;  %v651_v49 = vmul.f32 %v2843_v45, %v3476_v41  ;;  %v3278_v39 = vpop.eup %3277  ;;  %2893 = vmatpush3.bf16.msra.mxu0 %v3106_v18  ;;  %v3113_v26 = vld [vmem:[%s4112_s4 + $0x20] sm:$0xff]   ;;  %v3118_v38 = vld [vmem:[%s4112_s4 + $0x128] sm:$0xff]   ;;  %v3121_v43 = vld [vmem:[%s4112_s4 + $0x30] sm:$0xff]   ;;  %v770_v18 = vunpack.c.h.bf16 %v3305_v12  ;;  %4121 = vst [vmem:[#allocation5_spill] sm:$0xff] %v3693_v20  ;;  %v3324_v12 = vmov 1983009808  }
 0x140   : > { %3044 = vset.pattern.permute.xlu0 %v4115_v32  ;;  %3287 = vrcp.f32 %v729_v53  ;;  %v730_v56 = vadd.f32 1.0, %v3278_v39  ;;  %2894 = vmatprep.subr.bf16.mxu0 %v3108_v21  ;;  %v3122_v45 = vld [vmem:[%s4112_s4 + $0x130] sm:$0xff]   ;;  %v3715_v15 = vunpack.c.l.s4 %v3324_v12  ;;  %v891_v21 = vunpack.c.l.bf16 %v3445_v28 }
 0x141   : > { %815 = vperm.xlu0 %3044, %v3272_v46   ;;  %v670_v36 = vadd.f32 %v3482_v44, %v651_v49  ;;  %v2645_v41 = vmul.f32 -1.442695, %v669_v48  ;;  %2851 = vmatpush3.bf16.msra.mxu1 %v3109_v22  ;;  %v3125_v48 = vld [vmem:[%s4112_s4 + $0x38] sm:$0xff]   ;;  %v3697_v22 = vld [vmem:[%s3402_s23 + $0x10] sm:$0xff]   ;;  %v894_v12 = vunpack.c.h.bf16 %v3452_v30 }
 0x142   : > { %v3280_v55 = vpop.eup %3279  ;;  %2852 = vmatprep.subr.bf16.mxu1 %v3111_v24  ;;  %v3126_v49 = vld [vmem:[%s4112_s4 + $0x138] sm:$0xff]   ;;  %4123 = vst [vmem:[#allocation7_spill] sm:$0xff] %v3715_v15  ;;  %v892_v24 = vunpack.c.h.bf16 %v3445_v28 }
 0x143   : > { %3045 = vset.pattern.permute.xlu1 %v3323_v33  ;;  %3289 = vpow2.f32 %v2645_v41  ;;  %v2646_v57 = vmul.f32 -1.442695, %v670_v36  ;;  %2895 = vmatpush3.bf16.msra.mxu0 %v3110_v23  ;;  %v883_v23 = vunpack.c.l.bf16 %v3697_v22 }
 0x144   : > { %920 = vperm.xlu1 %3045, %v3272_v46   ;;  %3291 = vrcp.f32 %v730_v56  ;;  %2896 = vmatprep.subr.bf16.mxu0 %v3112_v25  ;;  %v3123_v46 = vld [vmem:[%s4112_s4 + $0x78] sm:$0xff]   ;;  %v772_v25 = vunpack.c.h.bf16 %v3693_v20  ;;  %v893_v20 = vunpack.c.l.bf16 %v3452_v30 }
 0x145   : > { %3047 = vset.pattern.permute.xlu0 %v3323_v33  ;;  %v3282_v44 = vpop.eup %3281  ;;  %3293 = vpow2.f32 %v2646_v57  ;;  %2853 = vmatpush3.bf16.msra.mxu1 %v3113_v26  ;;  %v3703_v26 = vld [vmem:[%s3426_s15 + $0x18] sm:$0xff]  }
 0x146   : > { %924 = vperm.xlu0 %3047, %v3276_v54   ;;  %v731_v58 = vadd.f32 1.0, %v3282_v44  ;;  %v3284_v59 = vpop.eup %3283  ;;  %2854 = vmatprep.subr.bf16.mxu1 %v3115_v34  ;;  %v3310_v34 = vld [vmem:[%s3402_s23 + $0x18] sm:$0xff]  }
 0x147   : > { %v3286_v60 = vpop.eup %3285 }
 0x148   : > { %3046 = vset.pattern.permute.xlu1 %v4115_v32  ;;  %3295 = vrcp.f32 %v731_v58  ;;  %v732_v63 = vadd.f32 1.0, %v3286_v60 }
 0x149   : > { %820 = vperm.xlu1 %3046, %v3276_v54   ;;  %2855 = vmatpush3.bf16.msra.mxu1 %v3117_v37  ;;  %v886_v37 = vunpack.c.h.bf16 %v3310_v34 }
 0x14a   : > { %3048 = vset.pattern.permute.xlu0 %v4115_v32  ;;  %v3288_v61 = vpop.eup %3287  ;;  %3297 = vrcp.f32 %v732_v63  ;;  %2856 = vmatprep.subr.bf16.mxu1 %v3119_v40  ;;  %v774_v40 = vunpack.c.h.bf16 %v3703_v26 }
 0x14b   : > { %825 = vperm.xlu0 %3048, %v3280_v55  }
 0x14d   : > { %3049 = vset.pattern.permute.xlu1 %v3323_v33  ;;  %v3290_v62 = vpop.eup %3289  ;;  %2857 = vmatpush3.bf16.msra.mxu1 %v3121_v43 }
 0x14e   : > { %928 = vperm.xlu1 %3049, %v3280_v55   ;;  %v3292_v0 = vpop.eup %3291  ;;  %v733_v1 = vadd.f32 1.0, %v3290_v62  ;;  %2858 = vmatprep.subr.bf16.mxu1 %v3123_v46 }
 0x14f   : > { %3051 = vset.pattern.permute.xlu0 %v3323_v33  ;;  %v3294_v2 = vpop.eup %3293 }
 0x150   : > { %932 = vperm.xlu0 %3051, %v3284_v59   ;;  %3299 = vrcp.f32 %v733_v1  ;;  %v734_v4 = vadd.f32 1.0, %v3294_v2 }
 0x151   : > { %2859 = vmatpush3.bf16.msra.mxu1 %v3125_v48 }
 0x152   : > { %3050 = vset.pattern.permute.xlu1 %v4115_v32  ;;  %v3296_v3 = vpop.eup %3295  ;;  %3301 = vrcp.f32 %v734_v4  ;;  %2866 = vmatprep.subr.bf16.mxu1 %v3127_v50  ;;  %v777_v50 = vunpack.c.l.bf16 %v3442_v27 }
 0x153   : > { %830 = vperm.xlu1 %3050, %v3284_v59  }
 0x154   : > { %3052 = vset.pattern.permute.xlu0 %v4115_v32  ;;  %v3298_v9 = vpop.eup %3297 }
 0x155   : > { %835 = vperm.xlu0 %3052, %v3288_v61  }
 0x157   : > { %3053 = vset.pattern.permute.xlu1 %v3323_v33 }
 0x158   : > { %936 = vperm.xlu1 %3053, %v3288_v61  }
 0x159   : > { %3055 = vset.pattern.permute.xlu0 %v3323_v33 }
 0x15a   : > { %940 = vperm.xlu0 %3055, %v3292_v0   ;;  %v3300_v14 = vpop.eup %3299 }
 0x15c   : > { %3054 = vset.pattern.permute.xlu1 %v4115_v32  ;;  %v3302_v19 = vpop.eup %3301 }
 0x15d   : > { %840 = vperm.xlu1 %3054, %v3292_v0  }
 0x15e   : > { %3056 = vset.pattern.permute.xlu0 %v4115_v32 }
 0x15f   : > { %845 = vperm.xlu0 %3056, %v3296_v3  }
 0x161   : > { %3057 = vset.pattern.permute.xlu1 %v3323_v33 }
 0x162   : > { %944 = vperm.xlu1 %3057, %v3296_v3  }
 0x163   : > { %3059 = vset.pattern.permute.xlu0 %v3323_v33 }
 0x164   : > { %948 = vperm.xlu0 %3059, %v3298_v9  }
 0x166   : > { %3058 = vset.pattern.permute.xlu1 %v4115_v32 }
 0x167   : > { %850 = vperm.xlu1 %3058, %v3298_v9   ;;  %v880_v9 = vunpack.c.h.bf16 %v3303_v7 }
 0x168   : > { %3060 = vset.pattern.permute.xlu0 %v4115_v32  ;;  %v779_v32 = vunpack.c.l.bf16 %v3448_v29 }
 0x169   : > { %855 = vperm.xlu0 %3060, %v3300_v14  }
 0x16b   : > { %860 = vperm.xlu1 %3058, %v3302_v19  }
 0x16d   : > { %3062 = vset.pattern.permute.xlu0 %v3323_v33 }
 0x16e   : > { %956 = vperm.xlu0 %3062, %v3302_v19  }
 0x16f   : > { %3061 = vset.pattern.permute.xlu1 %v3323_v33  ;;  %v3114_v33 = vld [vmem:[%s4112_s4 + $0x120] sm:$0xff]  }
 0x170   : > { %952 = vperm.xlu1 %3061, %v3300_v14   ;;  %2897 = vmatpush3.bf16.msra.mxu0 %v3114_v33  ;;  %v768_v14 = vunpack.c.h.bf16 %v3304_v10  ;;  %v773_v33 = vunpack.c.l.bf16 %v3703_v26 }
 0x171   : > { %2898 = vmatprep.subr.bf16.mxu0 %v3116_v35  ;;  %v885_v35 = vunpack.c.l.bf16 %v3310_v34 }
 0x174   : > { %2899 = vmatpush3.bf16.msra.mxu0 %v3118_v38 }
 0x175   : > { %2900 = vmatprep.subr.bf16.mxu0 %v3120_v42  ;;  %v3311_v42 = vld [vmem:[%s3426_s15 + $0x20] sm:$0xff]  }
 0x176   : > { %v775_v43 = vunpack.c.l.bf16 %v3311_v42 }
 0x178   : > { %2901 = vmatpush3.bf16.msra.mxu0 %v3122_v45  ;;  %v3312_v45 = vld [vmem:[%s3402_s23 + $0x20] sm:$0xff]  }
 0x179   : > { %2902 = vmatprep.subr.bf16.mxu0 %v3124_v47  ;;  %v887_v46 = vunpack.c.l.bf16 %v3312_v45  ;;  %v778_v47 = vunpack.c.h.bf16 %v3442_v27  ;;  %v888_v48 = vunpack.c.h.bf16 %v3312_v45 }
 0x17c   : > { %2903 = vmatpush3.bf16.msra.mxu0 %v3126_v49  ;;  %v776_v49 = vunpack.c.h.bf16 %v3311_v42  ;;  %v781_v42 = vunpack.c.l.bf16 %v3456_v31 }
 0x17d   : > { %2932 = vmatprep.subr.bf16.mxu0 %v3128_v51  ;;  %v3313_v51 = vld [vmem:[%s3402_s23 + $0x28] sm:$0xff]  }
 0x17e   : > { %v889_v7 = vunpack.c.l.bf16 %v3313_v51  ;;  %v890_v10 = vunpack.c.h.bf16 %v3313_v51  ;;  %v782_v51 = vunpack.c.h.bf16 %v3456_v31 }
 0x1a2   : > { %v3646_v36 = vpop.permute.xlu0 %785 }
 0x1a3   : > { %v863_v28 = vmul.f32 %v3646_v36, %v767_v11 }
 0x1a4   : > { %v3648_v52 = vpop.permute.xlu1 %900 }
 0x1a7   : > { %v3650_v53 = vpop.permute.xlu0 %896 }
 0x1aa   : > { %v3652_v54 = vpop.permute.xlu1 %795 }
 0x1ac   : > { %v3654_v39 = vpop.permute.xlu0 %790 }
 0x1ad   : > { %v864_v27 = vmul.f32 %v3654_v39, %v768_v14  ;;  %v959_v39 = vmul.f32 %v3650_v53, %v879_v8  ;;  %v865_v14 = vmul.f32 %v3652_v54, %v769_v13  ;;  %v4124_v13 = vunpack.c.h.bf16 %v3697_v22 }
 0x1af   : > { %v3656_v41 = vpop.permute.xlu1 %904 }
 0x1b0   : > { %v961_v34 = vmul.f32 %v3656_v41, %v881_v16 }
 0x1b1   : > { %v3658_v55 = vpop.permute.xlu0 %908 }
 0x1b2   : > { %v962_v31 = vmul.f32 %v3658_v55, %v882_v17  ;;  %v977_v36 = vadd.f32 %v961_v34, %v865_v14  ;;  %v4132_v14 = vlaneseq }
 0x1b4   : > { %v3660_v56 = vpop.permute.xlu1 %800 }
 0x1b5   : > { %v866_v15 = vmul.f32 %v3660_v56, %v770_v18 }
 0x1b6   : > { %v3662_v44 = vpop.permute.xlu0 %805 }
 0x1b7   : > { %4118 = vst [vmem:[#allocation2_spill] sm:$0xff] %v3662_v44  ;;  %v978_v11 = vadd.f32 %v962_v31, %v866_v15  ;;  %v1037_v31 = vshrl.u32 %v4132_v14, 7  ;;  %v3138_v14 = vld [vmem:[%s4112_s4 + $0x210] sm:$0xff]  }
 0x1b9   : > { %v3664_v57 = vpop.permute.xlu1 %912 }
 0x1ba   : > { %v963_v8 = vmul.f32 %v3664_v57, %v883_v23 }
 0x1bb   : > { %v3666_v58 = vpop.permute.xlu0 %916 }
 0x1bc   : > { %4119 = vst [vmem:[#allocation3_spill] sm:$0xff] %v3666_v58 }
 0x1be   : > { %v3668_v59 = vpop.permute.xlu1 %810  ;;  %v4129_v23 = vld [vmem:[#allocation2_spill] sm:$0xff] }
 0x1bf   : > { %v868_v54 = vmul.f32 %v3668_v59, %v772_v25  ;;  %v975_v25 = vadd.f32 %v959_v39, %v863_v28 }
 0x1c0   : > { %v3670_v60 = vpop.permute.xlu0 %815 }
 0x1c1   : > { %4120 = vst [vmem:[#allocation4_spill] sm:$0xff] %v3670_v60 }
 0x1c3   : > { %v3672_v61 = vpop.permute.xlu1 %920 }
 0x1c4   : > { %v965_v55 = vmul.f32 %v3672_v61, %v885_v35 }
 0x1c5   : > { %v3674_v62 = vpop.permute.xlu0 %924 }
 0x1c8   : > { %v3676_v63 = vpop.permute.xlu1 %820 }
 0x1c9   : > { %v870_v56 = vmul.f32 %v3676_v63, %v774_v40 }
 0x1ca   : > { %v3678_v0 = vpop.permute.xlu0 %825 }
 0x1cb   : > { %v871_v63 = vmul.f32 %v3678_v0, %v775_v43 }
 0x1cd   : > { %v3680_v1 = vpop.permute.xlu1 %928 }
 0x1cf   : > { %v3682_v2 = vpop.permute.xlu0 %932 }
 0x1d2   : > { %v3684_v3 = vpop.permute.xlu1 %830 }
 0x1d4   : > { %v3686_v4 = vpop.permute.xlu0 %835 }
 0x1d5   : > { %v873_v30 = vmul.f32 %v3686_v4, %v777_v50 }
 0x1d7   : > { %v937_v5 = vpop.permute.xlu1 %936 }
 0x1d8   : > { %v969_v60 = vmul.f32 %v937_v5, %v889_v7  ;;  %v968_v5 = vmul.f32 %v3682_v2, %v888_v48  ;;  %v4126_v2 = vld [vmem:[#allocation4_spill] sm:$0xff] }
 0x1d9   : > { %v941_v6 = vpop.permute.xlu0 %940  ;;  %v869_v18 = vmul.f32 %v4126_v2, %v773_v33 }
 0x1da   : > { %v970_v58 = vmul.f32 %v941_v6, %v890_v10  ;;  %v985_v6 = vadd.f32 %v969_v60, %v873_v30  ;;  %v992_v60 = vpack.c.bf16 %v978_v11, %v977_v36 }
 0x1dc   : > { %v841_v19 = vpop.permute.xlu1 %840 }
 0x1dd   : > { %v874_v45 = vmul.f32 %v841_v19, %v778_v47  ;;  %v872_v19 = vmul.f32 %v3684_v3, %v776_v49  ;;  %v966_v3 = vmul.f32 %v3674_v62, %v886_v37  ;;  %v4127_v37 = vld [vmem:[#allocation5_spill] sm:$0xff] }
 0x1de   : > { %v3707_v38 = vpop.permute.xlu0 %845  ;;  %v4128_v57 = vunpack.c.l.bf16 %v4127_v37 }
 0x1df   : > { %4122 = vst [vmem:[#allocation6_spill] sm:$0xff] %v3707_v38  ;;  %v780_v38 = vunpack.c.h.bf16 %v3448_v29  ;;  %v960_v29 = vmul.f32 %v3648_v52, %v880_v9  ;;  %v986_v16 = vadd.f32 %v970_v58, %v874_v45  ;;  %v967_v52 = vmul.f32 %v3680_v1, %v887_v46  ;;  %v4125_v1 = vld [vmem:[#allocation3_spill] sm:$0xff] }
 0x1e0   : > { %v984_v4 = vadd.f32 %v968_v5, %v872_v19  ;;  %v964_v17 = vmul.f32 %v4125_v1, %v4124_v13  ;;  %v982_v40 = vadd.f32 %v966_v3, %v870_v56  ;;  %v867_v0 = vmul.f32 %v4129_v23, %v4128_v57 }
 0x1e1   : > { %v945_v26 = vpop.permute.xlu1 %944  ;;  %v976_v41 = vadd.f32 %v960_v29, %v864_v27  ;;  %v996_v59 = vpack.c.bf16 %v986_v16, %v985_v6  ;;  %v983_v61 = vadd.f32 %v967_v52, %v871_v63  ;;  %v1004_v45 = vshrl.u32 %v992_v60, 16  ;;  %v4131_v29 = vld [vmem:[#allocation7_spill] sm:$0xff] }
 0x1e2   : > { %v971_v35 = vmul.f32 %v945_v26, %v891_v21  ;;  %v980_v43 = vadd.f32 %v964_v17, %v868_v54  ;;  %v979_v10 = vadd.f32 %v963_v8, %v867_v0  ;;  %v1035_v39 = vunpack.c.0.s8 %v4131_v29  ;;  %v3136_v29 = vld [vmem:[%s4112_s4 + $0x250] sm:$0xff]  }
 0x1e3   : > { %v949_v44 = vpop.permute.xlu0 %948  ;;  %v995_v48 = vpack.c.bf16 %v984_v4, %v983_v61  ;;  %v991_v33 = vpack.c.bf16 %v976_v41, %v975_v25  ;;  %v1020_v34 = vshrl.u32 %v996_v59, 16  ;;  %v3325_v16 = vmov 1934713408  }
 0x1e4   : > { %v972_v62 = vmul.f32 %v949_v44, %v892_v24  ;;  %v993_v28 = vpack.c.bf16 %v980_v43, %v979_v10  ;;  %v1066_v36 = vunpack.c.l.s4 %v3325_v16  ;;  %v1038_v5 = vsub.s32 %v1035_v39, %v1037_v31  ;;  %v3137_v39 = vld [vmem:[%s4112_s4 + $0x90] sm:$0xff]   ;;  %v3147_v16 = vld [vmem:[%s4112_s4 + $0xe8] sm:$0xff]  }
 0x1e5   : > { %v1019_v19 = vshrl.u32 %v995_v48, 16  ;;  %v1017_v30 = vpack.i.b16 %v996_v59, %v995_v48 }
 0x1e6   : > { %v851_v47 = vpop.permute.xlu1 %850  ;;  %v4130_v22 = vld [vmem:[#allocation6_spill] sm:$0xff]  ;;  %v1067_v4 = vunpack.c.0.s8 %v1066_v36  ;;  %v3148_v36 = vld [vmem:[%s4112_s4 + $0x268] sm:$0xff]  }
 0x1e7   : > { %v876_v58 = vmul.f32 %v851_v47, %v780_v38  ;;  %v981_v38 = vadd.f32 %v965_v55, %v869_v18  ;;  %v875_v49 = vmul.f32 %v4130_v22, %v779_v32  ;;  %v1021_v11 = vpack.i.b16 %v1020_v34, %v1019_v19  ;;  %v3140_v19 = vld [vmem:[%s4112_s4 + $0x258] sm:$0xff]  }
 0x1e8   : > { %v856_v53 = vpop.permute.xlu0 %855  ;;  %v3757_v61 = vsub.s32 %v1067_v4, %v1037_v31  ;;  %v4133_v34 = vmov 0   ;;  %v3139_v31 = vld [vmem:[%s4112_s4 + $0xd8] sm:$0xff]  }
 0x1e9   : > { %v988_v50 = vadd.f32 %v972_v62, %v876_v58  ;;  %v994_v15 = vpack.c.bf16 %v982_v40, %v981_v38  ;;  %v987_v21 = vadd.f32 %v971_v35, %v875_v49  ;;  %v877_v44 = vmul.f32 %v856_v53, %v781_v42 }
 0x1ea   : > { %v861_v9 = vpop.permute.xlu1 %860  ;;  %v1001_v42 = vpack.i.b16 %v992_v60, %v991_v33 }
 0x1eb   : > { %v878_v24 = vmul.f32 %v861_v9, %v782_v51  ;;  %v997_v47 = vpack.c.bf16 %v988_v50, %v987_v21  ;;  %v1012_v41 = vshrl.u32 %v994_v15, 16  ;;  %v1009_v53 = vpack.i.b16 %v994_v15, %v993_v28  ;;  %v3131_v21 = vld [vmem:[%s4112_s4 + $0xc8] sm:$0xff]  }
 0x1ec   : > { %v1031_v8 = vcombine.low %v1001_v42, %v1017_v30  ;;  %v1032_v63 = vcombine.high %v1001_v42, %v1017_v30  ;;  %v3146_v30 = vld [vmem:[%s4112_s4 + $0x220] sm:$0xff]   ;;  %v3151_v42 = vld [vmem:[%s4112_s4 + $0xf0] sm:$0xff]  }
 0x1ed   : > { %v957_v46 = vpop.permute.xlu0 %956  ;;  %v1027_v54 = vshrl.u32 %v997_v47, 16 }
 0x1ee   : > { %v974_v7 = vmul.f32 %v957_v46, %v894_v12  ;;  %v1003_v12 = vshrl.u32 %v991_v33, 16  ;;  %v3755_v25 = vrot.slane %v1032_v63, %v1038_v5  ;;  %v1039_v35 = vrot.slane %v1031_v8, %v1038_v5  ;;  %v3130_v33 = vld [vmem:[%s4112_s4 + $0x200] sm:$0xff]  }
 0x1ef   : > { %v953_v27 = vpop.permute.xlu1 %952  ;;  %v3160_v63 = vld [vmem:[%s4112_s4 + $0x340] sm:$0xff]  }
 0x1f0   : > { %v973_v26 = vmul.f32 %v953_v27, %v893_v20  ;;  %v990_v32 = vadd.f32 %v974_v7, %v878_v24  ;;  %v1005_v51 = vpack.i.b16 %v1004_v45, %v1003_v12  ;;  %v1011_v20 = vshrl.u32 %v993_v28, 16  ;;  %v3129_v7 = vld [vmem:[%s4112_s4 + $0x80] sm:$0xff]   ;;  %v3134_v45 = vld [vmem:[%s4112_s4 + $0x208] sm:$0xff]   ;;  %v3135_v28 = vld [vmem:[%s4112_s4 + $0xd0] sm:$0xff]  }
 0x1f1   : > { %v3144_v12 = vld [vmem:[%s4112_s4 + $0x260] sm:$0xff]  }
 0x1f2   : > { %v989_v56 = vadd.f32 %v973_v26, %v877_v44  ;;  %v1013_v6 = vpack.i.b16 %v1012_v41, %v1011_v20  ;;  %v1099_v1 = vcombine.low %v1005_v51, %v1021_v11  ;;  %v1100_v17 = vcombine.high %v1005_v51, %v1021_v11  ;;  %v3132_v44 = vld [vmem:[%s4112_s4 + $0x248] sm:$0xff]   ;;  %v3145_v41 = vld [vmem:[%s4112_s4 + $0xa0] sm:$0xff]   ;;  %v3152_v51 = vld [vmem:[%s4112_s4 + $0x270] sm:$0xff]  }
 0x1f3   : > { %v3133_v26 = vld [vmem:[%s4112_s4 + $0x88] sm:$0xff]   ;;  %v3153_v20 = vld [vmem:[%s4112_s4 + $0xb0] sm:$0xff]  }
 0x1f4   : > { %v998_v52 = vpack.c.bf16 %v990_v32, %v989_v56  ;;  %v1107_v62 = vrot.slane %v1099_v1, %v1038_v5  ;;  %v3761_v0 = vrot.slane %v1100_v17, %v1038_v5  ;;  %v3142_v32 = vld [vmem:[%s4112_s4 + $0x218] sm:$0xff]   ;;  %v3143_v56 = vld [vmem:[%s4112_s4 + $0xe0] sm:$0xff]   ;;  %v3149_v11 = vld [vmem:[%s4112_s4 + $0xa8] sm:$0xff]  }
 0x1f5   : > { %v3162_v1 = vld [vmem:[%s4112_s4 + $0x300] sm:$0xff]  }
 0x1f6   : > { %v1025_v55 = vpack.i.b16 %v998_v52, %v997_v47  ;;  %v1028_v3 = vshrl.u32 %v998_v52, 16  ;;  %v3141_v47 = vld [vmem:[%s4112_s4 + $0x98] sm:$0xff]   ;;  %v3150_v52 = vld [vmem:[%s4112_s4 + $0x228] sm:$0xff]  }
 0x1f8   : > { %v1029_v58 = vpack.i.b16 %v1028_v3, %v1027_v54  ;;  %v1047_v9 = vcombine.low %v1009_v53, %v1025_v55  ;;  %v1048_v13 = vcombine.high %v1009_v53, %v1025_v55  ;;  %v3155_v53 = vld [vmem:[%s4112_s4 + $0xf8] sm:$0xff]  }
 0x1f9   : > { %v3156_v54 = vld [vmem:[%s4112_s4 + $0x278] sm:$0xff]  }
 0x1fa   : > { %v3753_v2 = vrot.slane %v1048_v13, %v1038_v5  ;;  %v1115_v18 = vcombine.low %v1013_v6, %v1029_v58  ;;  %v1055_v40 = vrot.slane %v1047_v9, %v1038_v5  ;;  %v1116_v59 = vcombine.high %v1013_v6, %v1029_v58  ;;  %v3157_v55 = vld [vmem:[%s4112_s4 + $0xb8] sm:$0xff]   ;;  %v3159_v6 = vld [vmem:[%s4112_s4 + $0x1c0] sm:$0xff]  }
 0x1fb   : > { %v3158_v3 = vld [vmem:[%s4112_s4 + $0x238] sm:$0xff]   ;;  %v3161_v58 = vld [vmem:[%s4112_s4 + $0x180] sm:$0xff]  }
 0x1fc   : > { %v1123_v60 = vrot.slane %v1115_v18, %v1038_v5  ;;  %v3759_v37 = vrot.slane %v1116_v59, %v1038_v5  ;;  %v1063_v57 = vcombine.low %v1039_v35, %v1055_v40  ;;  %v1064_v23 = vcombine.high %v1039_v35, %v1055_v40  ;;  %v3154_v5 = vld [vmem:[%s4112_s4 + $0x230] sm:$0xff]   ;;  %v3164_v18 = vld [vmem:[%s4112_s4 + $0x348] sm:$0xff]  }
 0x1fd   : > { %v1080_v43 = vcombine.high %v3755_v25, %v3753_v2  ;;  %v1079_v8 = vcombine.low %v3755_v25, %v3753_v2  ;;  %v3163_v2 = vld [vmem:[%s4112_s4 + $0x1c8] sm:$0xff]   ;;  %v3167_v35 = vld [vmem:[%s4112_s4 + $0x1d0] sm:$0xff]  }
 0x1fe   : > { %v1131_v38 = vcombine.low %v1107_v62, %v1123_v60  ;;  %v1132_v46 = vcombine.high %v1107_v62, %v1123_v60  ;;  %v1147_v48 = vcombine.low %v3761_v0, %v3759_v37  ;;  %v3781_v10 = vrot.slane %v1063_v57, %v3757_v61  ;;  %v3165_v59 = vld [vmem:[%s4112_s4 + $0x188] sm:$0xff]   ;;  %v3169_v62 = vld [vmem:[%s4112_s4 + $0x190] sm:$0xff]   ;;  %v3172_v57 = vld [vmem:[%s4112_s4 + $0x358] sm:$0xff]  }
 0x1ff   : > { %v3768_v22 = vrot.slane %v1080_v43, %v3757_v61  ;;  %v3784_v15 = vrot.slane %v1064_v23, %v3757_v61  ;;  %v1148_v4 = vcombine.high %v3761_v0, %v3759_v37  ;;  %v3894_v13 = vrot.slane %v1079_v8, %v3757_v61  ;;  %v3166_v25 = vld [vmem:[%s4112_s4 + $0x308] sm:$0xff]   ;;  %v3170_v60 = vld [vmem:[%s4112_s4 + $0x310] sm:$0xff]   ;;  %v3171_v37 = vld [vmem:[%s4112_s4 + $0x1d8] sm:$0xff]  }
 0x200   : > { %v1139_v49 = vrot.slane %v1131_v38, %v3757_v61  ;;  %v3772_v50 = vrot.slane %v1132_v46, %v3757_v61  ;;  %v3797_v24 = vrot.slane %v1147_v48, %v3757_v61  ;;  %v1095_v9 = vcombine.high %v3781_v10, %v4133_v34  ;;  %v3173_v23 = vld [vmem:[%s4112_s4 + $0x198] sm:$0xff]   ;;  %v3175_v43 = vld [vmem:[%s4112_s4 + $0x1e0] sm:$0xff]   ;;  %v3212_v8 = vld [vmem:[%s4112_s4 + $0x390] sm:$0xff]  }
 0x201   : > { %v3909_v40 = vrot.slane %v1148_v4, %v3757_v61  ;;  %v3168_v61 = vld [vmem:[%s4112_s4 + $0x350] sm:$0xff]   ;;  %v3174_v0 = vld [vmem:[%s4112_s4 + $0x318] sm:$0xff]   ;;  %v3176_v38 = vld [vmem:[%s4112_s4 + $0x360] sm:$0xff]  }
 0x202   : > { %v1163_v27 = vcombine.high %v1139_v49, %v4133_v34  ;;  %2230 = vmatprep.mubr.bf16.mxu1 %v1139_v49  ;;  %2310 = vmatprep.mubr.bf16.mxu0 %v3772_v50  ;;  %v1164_v17 = vcombine.high %v3772_v50, %v4133_v34  ;;  %v3177_v46 = vld [vmem:[%s4112_s4 + $0x1a0] sm:$0xff]   ;;  %v3179_v49 = vld [vmem:[%s4112_s4 + $0x1e8] sm:$0xff]   ;;  %v3214_v4 = vld [vmem:[%s4112_s4 + $0x398] sm:$0xff]  }
 0x203   : > { %2231 = vmatmul.mubr.bf16.vlgmr.msra.gmra.mrb[0].mxu1 %v3781_v10  ;;  %2311 = vmatmul.mubr.bf16.vlgmr.msra.gmra.mrb[32].mxu0 %v3784_v15  ;;  %v3178_v48 = vld [vmem:[%s4112_s4 + $0x320] sm:$0xff]   ;;  %v3180_v50 = vld [vmem:[%s4112_s4 + $0x368] sm:$0xff]   ;;  %v3183_v10 = vld [vmem:[%s4112_s4 + $0x1f0] sm:$0xff]  }
 0x204   : > { %2867 = vmatpush3.bf16.msra.mxu1 %v3129_v7  ;;  %2933 = vmatpush3.bf16.msra.mxu0 %v3130_v33  ;;  %v3181_v7 = vld [vmem:[%s4112_s4 + $0x1a8] sm:$0xff]  }
 0x205   : > { %2270 = vmatprep.mubr.bf16.mxu1 %v1163_v27  ;;  %2390 = vmatprep.mubr.bf16.mxu0 %v3797_v24  ;;  %v3182_v33 = vld [vmem:[%s4112_s4 + $0x328] sm:$0xff]   ;;  %v3184_v27 = vld [vmem:[%s4112_s4 + $0x370] sm:$0xff]  }
 0x206   : > { %2868 = vmatprep.subr.bf16.mxu1 %v3131_v21  ;;  %2934 = vmatprep.subr.bf16.mxu0 %v3132_v44  ;;  %v3185_v21 = vld [vmem:[%s4112_s4 + $0x1b0] sm:$0xff]  }
 0x207   : > { %v3186_v44 = vld [vmem:[%s4112_s4 + $0x330] sm:$0xff]  }
 0x208   : > { %2869 = vmatpush3.bf16.msra.mxu1 %v3133_v26  ;;  %2935 = vmatpush3.bf16.msra.mxu0 %v3134_v45  ;;  %v3187_v26 = vld [vmem:[%s4112_s4 + $0x1f8] sm:$0xff]  }
 0x209   : > { %2870 = vmatprep.subr.bf16.mxu1 %v3135_v28  ;;  %2936 = vmatprep.subr.bf16.mxu0 %v3136_v29  ;;  %v3188_v45 = vld [vmem:[%s4112_s4 + $0x378] sm:$0xff]  }
 0x20a   : > { %v3189_v28 = vld [vmem:[%s4112_s4 + $0x1b8] sm:$0xff]  }
 0x20b   : > { %v3190_v29 = vld [vmem:[%s4112_s4 + $0x338] sm:$0xff]  }
 0x20c   : > { %2871 = vmatpush3.bf16.msra.mxu1 %v3137_v39  ;;  %2937 = vmatpush3.bf16.msra.mxu0 %v3138_v14  ;;  %v3191_v39 = vld [vmem:[%s4112_s4 + $0x2c0] sm:$0xff]  }
 0x20d   : > { %2872 = vmatprep.subr.bf16.mxu1 %v3139_v31  ;;  %2938 = vmatprep.subr.bf16.mxu0 %v3140_v19  ;;  %v3192_v14 = vld [vmem:[%s4112_s4 + $0x280] sm:$0xff]   ;;  %v1096_v31 = vcombine.high %v3784_v15, %v4133_v34  ;;  %v3193_v19 = vld [vmem:[%s4112_s4 + $0x2c8] sm:$0xff]   ;;  %v3195_v15 = vld [vmem:[%s4112_s4 + $0x2d0] sm:$0xff]  }
 0x210   : > { %2873 = vmatpush3.bf16.msra.mxu1 %v3141_v47  ;;  %2939 = vmatpush3.bf16.msra.mxu0 %v3142_v32  ;;  %v1165_v47 = vcombine.high %v3797_v24, %v4133_v34  ;;  %v3194_v32 = vld [vmem:[%s4112_s4 + $0x288] sm:$0xff]   ;;  %v3197_v24 = vld [vmem:[%s4112_s4 + $0x2d8] sm:$0xff]  }
 0x211   : > { %2874 = vmatprep.subr.bf16.mxu1 %v3143_v56  ;;  %2940 = vmatprep.subr.bf16.mxu0 %v3144_v12  ;;  %v3196_v56 = vld [vmem:[%s4112_s4 + $0x290] sm:$0xff]   ;;  %v3198_v12 = vld [vmem:[%s4112_s4 + $0x298] sm:$0xff]  }
 0x214   : > { %2875 = vmatpush3.bf16.msra.mxu1 %v3145_v41  ;;  %2941 = vmatpush3.bf16.msra.mxu0 %v3146_v30  ;;  %v3199_v41 = vld [vmem:[%s4112_s4 + $0x2e0] sm:$0xff]  }
 0x215   : > { %2876 = vmatprep.subr.bf16.mxu1 %v3147_v16  ;;  %2942 = vmatprep.subr.bf16.mxu0 %v3148_v36  ;;  %v3200_v30 = vld [vmem:[%s4112_s4 + $0x2a0] sm:$0xff]   ;;  %v3201_v16 = vld [vmem:[%s4112_s4 + $0x2e8] sm:$0xff]  }
 0x216   : > { %v3202_v36 = vld [vmem:[%s4112_s4 + $0x2a8] sm:$0xff]  }
 0x218   : > { %2877 = vmatpush3.bf16.msra.mxu1 %v3149_v11  ;;  %2943 = vmatpush3.bf16.msra.mxu0 %v3150_v52  ;;  %v3203_v11 = vld [vmem:[%s4112_s4 + $0x2f0] sm:$0xff]  }
 0x219   : > { %2878 = vmatprep.subr.bf16.mxu1 %v3151_v42  ;;  %2944 = vmatprep.subr.bf16.mxu0 %v3152_v51  ;;  %v3204_v52 = vld [vmem:[%s4112_s4 + $0x2b0] sm:$0xff]   ;;  %v3205_v42 = vld [vmem:[%s4112_s4 + $0x2f8] sm:$0xff]  }
 0x21a   : > { %v3206_v51 = vld [vmem:[%s4112_s4 + $0x2b8] sm:$0xff]  }
 0x21c   : > { %2879 = vmatpush3.bf16.msra.mxu1 %v3153_v20  ;;  %2945 = vmatpush3.bf16.msra.mxu0 %v3154_v5  ;;  %v3207_v20 = vld [vmem:[%s4112_s4 + $0x3c0] sm:$0xff]  }
 0x21d   : > { %2880 = vmatprep.subr.bf16.mxu1 %v3155_v53  ;;  %2946 = vmatprep.subr.bf16.mxu0 %v3156_v54  ;;  %v3208_v5 = vld [vmem:[%s4112_s4 + $0x380] sm:$0xff]   ;;  %v1097_v53 = vcombine.high %v3894_v13, %v4133_v34  ;;  %v3209_v54 = vld [vmem:[%s4112_s4 + $0x3c8] sm:$0xff]  }
 0x220   : > { %2881 = vmatpush3.bf16.msra.mxu1 %v3157_v55  ;;  %2947 = vmatpush3.bf16.msra.mxu0 %v3158_v3  ;;  %v1166_v55 = vcombine.high %v3909_v40, %v4133_v34  ;;  %v3210_v3 = vld [vmem:[%s4112_s4 + $0x388] sm:$0xff]  }
 0x221   : > { %2910 = vmatprep.subr.bf16.mxu1 %v3159_v6  ;;  %2976 = vmatprep.subr.bf16.mxu0 %v3160_v63  ;;  %v3211_v6 = vld [vmem:[%s4112_s4 + $0x3d0] sm:$0xff]   ;;  %v3213_v63 = vld [vmem:[%s4112_s4 + $0x3d8] sm:$0xff]  }
 0x223   : > { %2271 = vmatmul.mubr.bf16.vlgmr.msra.gmra.mrb[4].mxu1 %v1095_v9  ;;  %2391 = vmatmul.mubr.bf16.vlgmr.msra.gmra.mrb[36].mxu0 %v3894_v13  ;;  %v3216_v9 = vld [vmem:[%s4112_s4 + $0x3a0] sm:$0xff]   ;;  %v3217_v13 = vld [vmem:[%s4112_s4 + $0x3e8] sm:$0xff]  }
 0x224   : > { %2911 = vmatpush3.bf16.msra.mxu1 %v3161_v58  ;;  %2350 = vmatprep.mubr.bf16.mxu1 %v1164_v17  ;;  %v3215_v58 = vld [vmem:[%s4112_s4 + $0x3e0] sm:$0xff]   ;;  %v3219_v17 = vld [vmem:[%s4112_s4 + $0x3f0] sm:$0xff]  }
 0x225   : > { %2977 = vmatpush3.bf16.msra.mxu0 %v3162_v1  ;;  %2470 = vmatprep.mubr.bf16.mxu0 %v3909_v40  ;;  %v3218_v1 = vld [vmem:[%s4112_s4 + $0x3a8] sm:$0xff]   ;;  %v3222_v40 = vld [vmem:[%s4112_s4 + $0x3b8] sm:$0xff]  }
 0x226   : > { %2912 = vmatprep.subr.bf16.mxu1 %v3163_v2  ;;  %2978 = vmatprep.subr.bf16.mxu0 %v3164_v18  ;;  %v3220_v2 = vld [vmem:[%s4112_s4 + $0x3b0] sm:$0xff]   ;;  %v3221_v18 = vld [vmem:[%s4112_s4 + $0x3f8] sm:$0xff]  }
 0x228   : > { %2913 = vmatpush3.bf16.msra.mxu1 %v3165_v59  ;;  %v1098_v59 = vcombine.high %v3768_v22, %v4133_v34 }
 0x229   : > { %2979 = vmatpush3.bf16.msra.mxu0 %v3166_v25  ;;  %2914 = vmatprep.subr.bf16.mxu1 %v3167_v35 }
 0x22a   : > { %2980 = vmatprep.subr.bf16.mxu0 %v3168_v61 }
 0x22c   : > { %2915 = vmatpush3.bf16.msra.mxu1 %v3169_v62 }
 0x22d   : > { %2981 = vmatpush3.bf16.msra.mxu0 %v3170_v60  ;;  %2916 = vmatprep.subr.bf16.mxu1 %v3171_v37 }
 0x22e   : > { %2982 = vmatprep.subr.bf16.mxu0 %v3172_v57 }
 0x230   : > { %2917 = vmatpush3.bf16.msra.mxu1 %v3173_v23 }
 0x231   : > { %2983 = vmatpush3.bf16.msra.mxu0 %v3174_v0  ;;  %2918 = vmatprep.subr.bf16.mxu1 %v3175_v43 }
 0x232   : > { %2984 = vmatprep.subr.bf16.mxu0 %v3176_v38  ;;  %v2647_v38 = vld [vmem:[%s4113_s5] ss:$0 sm:$0xff] }
 0x234   : > { %2919 = vmatpush3.bf16.msra.mxu1 %v3177_v46 }
 0x235   : > { %2985 = vmatpush3.bf16.msra.mxu0 %v3178_v48  ;;  %2920 = vmatprep.subr.bf16.mxu1 %v3179_v49 }
 0x236   : > { %2986 = vmatprep.subr.bf16.mxu0 %v3180_v50 }
 0x238   : > { %2921 = vmatpush3.bf16.msra.mxu1 %v3181_v7 }
 0x239   : > { %2987 = vmatpush3.bf16.msra.mxu0 %v3182_v33  ;;  %2922 = vmatprep.subr.bf16.mxu1 %v3183_v10 }
 0x23a   : > { %2988 = vmatprep.subr.bf16.mxu0 %v3184_v27 }
 0x23c   : > { %2923 = vmatpush3.bf16.msra.mxu1 %v3185_v21 }
 0x23d   : > { %2989 = vmatpush3.bf16.msra.mxu0 %v3186_v44  ;;  %2924 = vmatprep.subr.bf16.mxu1 %v3187_v26 }
 0x23e   : > { %2990 = vmatprep.subr.bf16.mxu0 %v3188_v45 }
 0x240   : > { %2925 = vmatpush3.bf16.msra.mxu1 %v3189_v28 }
 0x241   : > { %2991 = vmatpush3.bf16.msra.mxu0 %v3190_v29  ;;  %2954 = vmatprep.subr.bf16.mxu1 %v3191_v39 }
 0x243   : > { %2351 = vmatmul.mubr.bf16.vlgmr.msra.gmra.mrb[8].mxu1 %v1096_v31 }
 0x244   : > { %2471 = vmatmul.mubr.bf16.vlgmr.msra.gmra.mrb[40].mxu0 %v3768_v22  ;;  %2955 = vmatpush3.bf16.msra.mxu1 %v3192_v14 }
 0x245   : > { %2430 = vmatprep.mubr.bf16.mxu1 %v1165_v47  ;;  %2956 = vmatprep.subr.bf16.mxu1 %v3193_v19 }
 0x248   : > { %2957 = vmatpush3.bf16.msra.mxu1 %v3194_v32 }
 0x249   : > { %2958 = vmatprep.subr.bf16.mxu1 %v3195_v15 }
 0x24c   : > { %2959 = vmatpush3.bf16.msra.mxu1 %v3196_v56 }
 0x24d   : > { %2960 = vmatprep.subr.bf16.mxu1 %v3197_v24 }
 0x250   : > { %2961 = vmatpush3.bf16.msra.mxu1 %v3198_v12 }
 0x251   : > { %2962 = vmatprep.subr.bf16.mxu1 %v3199_v41 }
 0x254   : > { %2963 = vmatpush3.bf16.msra.mxu1 %v3200_v30 }
 0x255   : > { %2964 = vmatprep.subr.bf16.mxu1 %v3201_v16 }
 0x258   : > { %2965 = vmatpush3.bf16.msra.mxu1 %v3202_v36 }
 0x259   : > { %2966 = vmatprep.subr.bf16.mxu1 %v3203_v11 }
 0x25c   : > { %2967 = vmatpush3.bf16.msra.mxu1 %v3204_v52 }
 0x25d   : > { %2968 = vmatprep.subr.bf16.mxu1 %v3205_v42 }
 0x260   : > { %2969 = vmatpush3.bf16.msra.mxu1 %v3206_v51 }
 0x261   : > { %2998 = vmatprep.subr.bf16.mxu1 %v3207_v20 }
 0x263   : > { %2431 = vmatmul.mubr.bf16.vlgmr.msra.gmra.mrb[12].mxu1 %v1097_v53 }
 0x264   : > { %2999 = vmatpush3.bf16.msra.mxu1 %v3208_v5  ;;  %2510 = vmatprep.mubr.bf16.mxu1 %v1166_v55 }
 0x265   : > { %3000 = vmatprep.subr.bf16.mxu1 %v3209_v54 }
 0x268   : > { %3001 = vmatpush3.bf16.msra.mxu1 %v3210_v3 }
 0x269   : > { %3002 = vmatprep.subr.bf16.mxu1 %v3211_v6 }
 0x26c   : > { %3003 = vmatpush3.bf16.msra.mxu1 %v3212_v8 }
 0x26d   : > { %3004 = vmatprep.subr.bf16.mxu1 %v3213_v63 }
 0x270   : > { %3005 = vmatpush3.bf16.msra.mxu1 %v3214_v4 }
 0x271   : > { %3006 = vmatprep.subr.bf16.mxu1 %v3215_v58 }
 0x274   : > { %3007 = vmatpush3.bf16.msra.mxu1 %v3216_v9 }
 0x275   : > { %3008 = vmatprep.subr.bf16.mxu1 %v3217_v13 }
 0x278   : > { %3009 = vmatpush3.bf16.msra.mxu1 %v3218_v1 }
 0x279   : > { %3010 = vmatprep.subr.bf16.mxu1 %v3219_v17 }
 0x27c   : > { %3011 = vmatpush3.bf16.msra.mxu1 %v3220_v2 }
 0x27d   : > { %3012 = vmatprep.subr.bf16.mxu1 %v3221_v18 }
 0x280   : > { %3013 = vmatpush3.bf16.msra.mxu1 %v3222_v40 }
 0x283   : > { %2511 = vmatmul.mubr.bf16.vlgmr.msra.gmra.mrb[16].mxu1 %v1098_v59 }
 0x2d6   : > { %v2860_v25 = vpop.f32.mrb[0].mxu1  ;;  %v2904_v35 = vpop.f32.mrb[32].mxu0 }
 0x2d7   : > { %v2861_v61 = vpop.f32.mrb[1].mxu1  ;;  %v2905_v62 = vpop.f32.mrb[33].mxu0 }
 0x2d8   : > { %v2862_v60 = vadd.f32 %v2861_v61, %v2860_v25  ;;  %v2906_v37 = vadd.f32 %v2905_v62, %v2904_v35  ;;  %v2863_v57 = vpop.f32.mrb[2].mxu1  ;;  %v2907_v23 = vpop.f32.mrb[34].mxu0 }
 0x2d9   : > { %v2864_v0 = vpop.f32.mrb[3].mxu1  ;;  %v2908_v43 = vpop.f32.mrb[35].mxu0 }
 0x2da   : > { %v2233_v22 = vadd.f32 %v2862_v60, %v2647_v38 }
 0x2f6   : > { %v2882_v46 = vpop.f32.mrb[4].mxu1  ;;  %v2948_v48 = vpop.f32.mrb[36].mxu0 }
 0x2f7   : > { %v2883_v49 = vpop.f32.mrb[5].mxu1  ;;  %v2949_v50 = vpop.f32.mrb[37].mxu0 }
 0x2f8   : > { %v2884_v34 = vadd.f32 %v2883_v49, %v2882_v46  ;;  %v2950_v7 = vadd.f32 %v2949_v50, %v2948_v48  ;;  %v2885_v33 = vpop.f32.mrb[6].mxu1  ;;  %v2951_v10 = vpop.f32.mrb[38].mxu0 }
 0x2f9   : > { %v2886_v27 = vpop.f32.mrb[7].mxu1  ;;  %v2952_v21 = vpop.f32.mrb[39].mxu0 }
 0x2fa   : > { %v2273_v44 = vadd.f32 %v2884_v34, %v2233_v22 }
 0x2fc   : > { %v2313_v26 = vadd.f32 %v2906_v37, %v2273_v44 }
 0x316   : > { %v2926_v45 = vpop.f32.mrb[8].mxu1 }
 0x317   : > { %v2992_v28 = vpop.f32.mrb[40].mxu0  ;;  %v2927_v29 = vpop.f32.mrb[9].mxu1 }
 0x318   : > { %v2928_v39 = vadd.f32 %v2927_v29, %v2926_v45  ;;  %v2993_v14 = vpop.f32.mrb[41].mxu0  ;;  %v2929_v31 = vpop.f32.mrb[10].mxu1 }
 0x319   : > { %v2994_v19 = vadd.f32 %v2993_v14, %v2992_v28  ;;  %v2995_v47 = vpop.f32.mrb[42].mxu0  ;;  %v2930_v32 = vpop.f32.mrb[11].mxu1 }
 0x31a   : > { %v2353_v15 = vadd.f32 %v2928_v39, %v2313_v26  ;;  %v2996_v56 = vpop.f32.mrb[43].mxu0 }
 0x31c   : > { %v2393_v24 = vadd.f32 %v2950_v7, %v2353_v15 }
 0x336   : > { %v2970_v12 = vpop.f32.mrb[12].mxu1 }
 0x337   : > { %v2971_v41 = vpop.f32.mrb[13].mxu1 }
 0x338   : > { %v2972_v30 = vadd.f32 %v2971_v41, %v2970_v12  ;;  %v2973_v16 = vpop.f32.mrb[14].mxu1 }
 0x339   : > { %v2974_v36 = vpop.f32.mrb[15].mxu1 }
 0x33a   : > { %v2433_v11 = vadd.f32 %v2972_v30, %v2393_v24 }
 0x33c   : > { %v2473_v52 = vadd.f32 %v2994_v19, %v2433_v11 }
 0x356   : > { %v3014_v42 = vpop.f32.mrb[16].mxu1 }
 0x357   : > { %v3015_v51 = vpop.f32.mrb[17].mxu1 }
 0x358   : > { %v3016_v20 = vadd.f32 %v3015_v51, %v3014_v42  ;;  %v3017_v5 = vpop.f32.mrb[18].mxu1 }
 0x359   : > { %v3018_v53 = vpop.f32.mrb[19].mxu1 }
 0x35a   : > { %v2513_v54 = vadd.f32 %v3016_v20, %v2473_v52 }
 0x35c   : > { %2519 = vst.msk [vmem:[%s279_s7] sm:$0xff] %vm2518_vm0, %v2513_v54 }
 0x35d PF: > { %s16_s21 = sadd.s32 1, %s3320_s21  }
 0x35e   : > { %p13_p5 = scmp.ge.s32.totalorder %s16_s21, 4  }
 0x360   :  { %15 = sbr.rel (!%p13_p5) target bundleno = 1 (0x1), region = 78 }

</bundles_post_ra>
